<compile_context>
chip_gen: v5e
topology: v5e:2x2
jax: 0.10.0
libtpu: 0.0.40
codegen_flags: <defaults>
</compile_context>

<pallas_src>
import functools

import jax
import jax.numpy as jnp
from jax.experimental import pallas as pl
from jax.experimental.pallas import tpu as pltpu


def _round_up(x, m):
    return ((x + m - 1) // m) * m


def _conv_mm_leaky_kernel(a_ref, w_ref, b_ref, o_ref):
    # a_ref: (TILE_M, K)      bf16 im2col patch tile (K = kh*kw*C, unpadded)
    # w_ref: (K, H_pad)       bf16 reshaped conv weights (whole array, resident)
    # b_ref: (1, H_pad)       f32 bias
    # o_ref: (TILE_M, H_pad)  bf16 output tile (lane-dense, unmasked stores)
    acc = jnp.dot(a_ref[...], w_ref[...], preferred_element_type=jnp.float32)
    acc = acc + b_ref[...]
    o_ref[...] = jnp.where(acc > 0, acc, 0.2 * acc).astype(o_ref.dtype)  # LeakyReLU(0.2)


def block_forward(x, weight, bias, *, stride=2, padding=1, tile_m=1024):
    """Pallas implementation of Block.forward: LeakyReLU(Conv2d(x)).

    x:      (N, C, H, W)   float32
    weight: (hidden, C, kh, kw)
    bias:   (hidden,)
    returns (N, hidden, Ho, Wo)   (NCHW, matching PyTorch)
    """
    N, C, H, W = x.shape
    hidden, _, kh, kw = weight.shape
    Ho = (H + 2 * padding - kh) // stride + 1
    Wo = (W + 2 * padding - kw) // stride + 1

    # ---- glue: im2col built directly in (N, Ho, Wo, kh*kw*C) order, in bf16 ----
    # Cast before the layout transpose so every downstream materialization
    # (pad, 9-slice concatenate, reshape) moves 2-byte elements.
    x_nhwc = jnp.transpose(x.astype(jnp.bfloat16), (0, 2, 3, 1))      # (N, H, W, C)
    x_padded = jnp.pad(
        x_nhwc, ((0, 0), (padding, padding), (padding, padding), (0, 0)))
    patches = [
        x_padded[:, i:i + Ho * stride:stride, j:j + Wo * stride:stride, :]
        for i in range(kh) for j in range(kw)
    ]                                                                 # each (N, Ho, Wo, C)
    A = jnp.concatenate(patches, axis=-1).reshape(N * Ho * Wo, kh * kw * C)

    # Permute the (tiny) weight tensor so its K ordering matches A: (kh, kw, C).
    W_mat = jnp.transpose(weight, (2, 3, 1, 0)).reshape(kh * kw * C, hidden)

    M, K = A.shape
    # Only the output-channel dim is padded to 128 lanes (zeros -> sliced off);
    # the contraction dim K stays unpadded in HBM (full-array-dim block is
    # legal, and Mosaic masks the lane padding internally in VMEM).
    H_pad = _round_up(hidden, 128)

    # M tile: multiple of 16 (bf16 sublane packing), capped so there are at
    # least 2 M tiles whenever possible (v7x has 2 TensorCores and the
    # "parallel" grid axis shards across them).
    tm = max(16, _round_up(min(tile_m, _round_up(M, 16)), 16))
    if M > 16:
        tm = min(tm, _round_up(pl.cdiv(M, 2), 16))
    M_pad = _round_up(M, tm)

    if M_pad != M:
        A = jnp.pad(A, ((0, M_pad - M), (0, 0)))
    W_mat = jnp.pad(W_mat, ((0, 0), (0, H_pad - hidden))).astype(jnp.bfloat16)
    b_mat = jnp.pad(bias, (0, H_pad - hidden)).reshape(1, H_pad).astype(jnp.float32)

    # Advisory cost so XLA schedules the surrounding transpose/slice sensibly.
    cost = pl.CostEstimate(
        flops=2 * M_pad * K * hidden,
        transcendentals=0,
        bytes_accessed=(M_pad * K * 2          # A (bf16)
                        + K * H_pad * 2        # W (bf16)
                        + H_pad * 4            # bias (f32)
                        + M_pad * H_pad * 2),  # out (bf16)
    )

    # Per-step VMEM (tm=1024): ~2x72 KiB A + resident W/bias + 2x256 KiB out,
    # well under the default scoped VMEM on v5e/v6e/v7x.
    out_mat = pl.pallas_call(
        _conv_mm_leaky_kernel,
        out_shape=jax.ShapeDtypeStruct((M_pad, H_pad), jnp.bfloat16),
        grid_spec=pl.GridSpec(
            grid=(M_pad // tm,),
            in_specs=[
                pl.BlockSpec((tm, K), lambda i: (i, 0)),         # A: tiled over M
                pl.BlockSpec((K, H_pad), lambda i: (0, 0)),      # W: whole array
                pl.BlockSpec((1, H_pad), lambda i: (0, 0)),      # bias
            ],
            out_specs=pl.BlockSpec((tm, H_pad), lambda i: (i, 0)),
        ),
        compiler_params=pltpu.CompilerParams(
            dimension_semantics=("parallel",),  # independent M tiles -> megacore sharding
        ),
        cost_estimate=cost,
    )(A, W_mat, b_mat)

    # Drop M / lane padding while still bf16, reshape/transpose to NCHW, then
    # cast back to the caller's dtype only at the very end.
    out = out_mat[:M, :hidden].reshape(N, Ho, Wo, hidden).transpose(0, 3, 1, 2)
    return out.astype(x.dtype)


if __name__ == "__main__":
    key = jax.random.PRNGKey(0)
    k_x, k_w, k_b = jax.random.split(key, 3)

    # small shapes consistent with the module
    batch, in_channels, spatial = 2, 4, 16
    hidden, kernel_size, stride, padding = 64, 3, 2, 1

    x = jax.random.normal(k_x, (batch, in_channels, spatial, spatial), jnp.float32)
    weight = jax.random.normal(
        k_w, (hidden, in_channels, kernel_size, kernel_size), jnp.float32) * 0.05
    bias = jax.random.normal(k_b, (hidden,), jnp.float32) * 0.01

    # tile_m=64 so the small test exercises a multi-step (pipelined) grid.
    fwd = jax.jit(functools.partial(
        block_forward, stride=stride, padding=padding, tile_m=64))
    out = jax.block_until_ready(fwd(x, weight, bias))

    # reference check (plain JAX f32 conv + LeakyReLU)
    ref = jax.lax.conv_general_dilated(
        x, weight, window_strides=(stride, stride),
        padding=((padding, padding), (padding, padding)),
        dimension_numbers=("NCHW", "OIHW", "NCHW"),
    ) + bias.reshape(1, hidden, 1, 1)
    ref = jnp.where(ref > 0, ref, 0.2 * ref)

    assert out.shape == (batch, hidden, spatial // 2, spatial // 2), out.shape
    # bf16 matmul operands and bf16 kernel output -> relaxed tolerance vs f32.
    assert jnp.allclose(out, ref, atol=3e-2, rtol=3e-2), float(
        jnp.max(jnp.abs(out - ref)))
    print("KERNEL_OK")
</pallas_src>

<mosaic_0001>
module attributes {stable_mosaic.version = 11 : i64} {
  func.func @_conv_mm_leaky_kernel(%arg0: i32, %arg1: memref<64x36xbf16, #tpu.memory_space<vmem>>, %arg2: memref<36x128xbf16, #tpu.memory_space<vmem>>, %arg3: memref<1x128xf32, #tpu.memory_space<vmem>>, %arg4: memref<64x128xbf16, #tpu.memory_space<vmem>>) attributes {dimension_semantics = [#tpu.dimension_semantics<parallel>], iteration_bounds = array<i64: 2>, scalar_prefetch = 0 : i64, scratch_operands = 0 : i64, tpu.core_type = #tpu.core_type<tc>, window_params = [{transform_indices = @transform_0, window_bounds = array<i64: 64, 36>}, {pipeline_mode = #tpu.pipeline_mode<synchronous>, transform_indices = @transform_1, window_bounds = array<i64: 36, 128>}, {pipeline_mode = #tpu.pipeline_mode<synchronous>, transform_indices = @transform_2, window_bounds = array<i64: 1, 128>}, {transform_indices = @transform_3, window_bounds = array<i64: 64, 128>}]} {
    %c0 = arith.constant 0 : index
    %c0_0 = arith.constant 0 : index
    %0 = vector.load %arg1[%c0, %c0_0] : memref<64x36xbf16, #tpu.memory_space<vmem>>, vector<64x36xbf16>
    %c0_1 = arith.constant 0 : index
    %c0_2 = arith.constant 0 : index
    %1 = vector.load %arg2[%c0_1, %c0_2] : memref<36x128xbf16, #tpu.memory_space<vmem>>, vector<36x128xbf16>
    %cst = arith.constant dense<0.000000e+00> : vector<64x128xf32>
    %2 = tpu.matmul %0, %1, %cst {dimension_numbers = #tpu.dot_dimension_numbers<[1], [0], [0], [1], [0, 0, 1, 1], [], []>} : vector<64x36xbf16>, vector<36x128xbf16>, vector<64x128xf32> -> vector<64x128xf32>
    %c0_3 = arith.constant 0 : index
    %c0_4 = arith.constant 0 : index
    %3 = vector.load %arg3[%c0_3, %c0_4] : memref<1x128xf32, #tpu.memory_space<vmem>>, vector<1x128xf32>
    %4 = vector.broadcast %3 : vector<1x128xf32> to vector<64x128xf32>
    %5 = arith.addf %2, %4 : vector<64x128xf32>
    %cst_5 = arith.constant 0.000000e+00 : f32
    %6 = vector.broadcast %cst_5 : f32 to vector<64x128xf32>
    %7 = arith.cmpf ogt, %5, %6 : vector<64x128xf32>
    %cst_6 = arith.constant 2.000000e-01 : f32
    %8 = vector.broadcast %cst_6 : f32 to vector<64x128xf32>
    %9 = arith.mulf %8, %5 : vector<64x128xf32>
    %10 = arith.select %7, %5, %9 : vector<64x128xi1>, vector<64x128xf32>
    %11 = arith.truncf %10 : vector<64x128xf32> to vector<64x128xbf16>
    %c0_7 = arith.constant 0 : index
    %c0_8 = arith.constant 0 : index
    %12 = vector.load %arg4[%c0_7, %c0_8] : memref<64x128xbf16, #tpu.memory_space<vmem>>, vector<64x128xbf16>
    tpu.vector_store %arg4[%c0_7, %c0_8], %11 {strides = array<i32>} : memref<64x128xbf16, #tpu.memory_space<vmem>>, vector<64x128xbf16>,
    return
  }
  func.func @transform_0(%arg0: i32) -> (i32, i32) {
    %c0_i32 = arith.constant 0 : i32
    %c0_i32_0 = arith.constant 0 : i32
    return %arg0, %c0_i32 : i32, i32
  }
  func.func @transform_1(%arg0: i32) -> (i32, i32) {
    %c0_i32 = arith.constant 0 : i32
    %c0_i32_0 = arith.constant 0 : i32
    %c0_i32_1 = arith.constant 0 : i32
    return %c0_i32, %c0_i32_0 : i32, i32
  }
  func.func @transform_2(%arg0: i32) -> (i32, i32) {
    %c0_i32 = arith.constant 0 : i32
    %c0_i32_0 = arith.constant 0 : i32
    %c0_i32_1 = arith.constant 0 : i32
    return %c0_i32, %c0_i32_0 : i32, i32
  }
  func.func @transform_3(%arg0: i32) -> (i32, i32) {
    %c0_i32 = arith.constant 0 : i32
    %c0_i32_0 = arith.constant 0 : i32
    return %arg0, %c0_i32 : i32, i32
  }
}

</mosaic_0001>

<bundles_post_ra>
// kernel: block_forward.1
= control target key start
LH: loop header
LB: loop body
LE: loop exit
PB: predicated region body
PF: predicated region fallthrough
CT: control target
= control target key end

     0   :  { %s483_s12 = smov 0   ;;  %s519_s0 = inlined_call_operand.vmem [shape: bf16[128,36], index: 0, kind: input, shape index: {}]   ;;  %s520_s1 = inlined_call_operand.vmem [shape: bf16[36,128], index: 1, kind: input, shape index: {}]   ;;  %s521_s2 = inlined_call_operand.vmem [shape: f32[1,128], index: 2, kind: input, shape index: {}]   ;;  %s522_s3 = inlined_call_operand.vmem [shape: bf16[128,128], index: 3, kind: output, shape index: {}]  }
   0x1 LB: > { %s369_s13 = sadd.s32 4294967295, %s461_s12   ;;  %p373_p0 = scmp.ge.s32.totalorder %s461_s12, 1  ;;  %s461_s12 = sphi %s483_s12, %s13_s12  }
   0x2   : > { %p138_p1 = scmp.lt.s32.totalorder %s461_s12, 3 }
   0x4   : > { %p139_p2 = pnand %p373_p0, %p138_p1 }
   0x5   : > { %s374_s16 = sshll.u32 (!%p139_p2), %s369_s13, 3 }
   0x6   : > { %142 = sbr.rel (%p139_p2) target bundleno = 178 (0xb2), region = 32  ;;  %p163_p3 = scmp.lt.s32.totalorder (!%p139_p2), %s374_s16, 15 }
   0xb   : > { %v187_v0 = vld [vmem:[%s520_s1 + $0x10] sm:$0x3]  ;;  %vm240_vm0 = vcmask 1041408   ;;  %s524_s16 = smov (!%p163_p3, %s374_s16), 15  ;;  %v413_v4 = vld [vmem:[%s520_s1 + $0x8] sm:$0xff]  ;;  %v412_v5 = vld [vmem:[%s520_s1] sm:$0xff] }
   0xc   : > { %v221_v1 = vunpack.c.l.b16 %v187_v0  ;;  %s375_s19 = sshll.u32 %s524_s16, 2  ;;  %vm227_vm1 = vcmask 293888   ;;  %v454_v12 = vld [vmem:[%s521_s2] ss:$0 sm:$0xff] }
   0xd   : > { %s166_s24 = scalar_lea.vmem %s519_s0, %s375_s19  ;;  %s172_s29 = scalar_lea.vmem %s522_s3, %s375_s19 }
   0xe   : > { %v224_v2 = vpack.c.b16 %v221_v1, %v221_v1  ;;  %v408_v6 = vld [vmem:[%s166_s24] sm:$0xff]  ;;  %v409_v7 = vld [vmem:[%s166_s24 + $0x8] sm:$0xff]  ;;  %v410_v8 = vld [vmem:[%s166_s24 + $0x10] sm:$0xff] }
   0xf   : > { %v411_v9 = vld [vmem:[%s166_s24 + $0x18] sm:$0xff] }
  0x10   : > { %v242_v3 = vsel %vm240_vm0, %v224_v2, 0 }
  0x11   : > { %249 = vmatpush.bf16.msra.mxu0 %v242_v3  ;;  %437 = vmatpush.bf16.msra.mxu1 %v242_v3 }
  0x12   : > { %438 = vmatpush.bf16.msra.mxu2 %v242_v3  ;;  %439 = vmatpush.bf16.msra.mxu3 %v242_v3 }
  0x15   : > { %250 = vmatpush.bf16.msra.mxu0 %v413_v4  ;;  %440 = vmatpush.bf16.msra.mxu1 %v413_v4 }
  0x16   : > { %441 = vmatpush.bf16.msra.mxu2 %v413_v4  ;;  %442 = vmatpush.bf16.msra.mxu3 %v413_v4 }
  0x19   : > { %251 = vmatpush.bf16.msra.mxu0 %v412_v5  ;;  %443 = vmatpush.bf16.msra.mxu1 %v412_v5 }
  0x1a   : > { %444 = vmatpush.bf16.msra.mxu2 %v412_v5  ;;  %445 = vmatpush.bf16.msra.mxu3 %v412_v5 }
  0x1c   : > { %402 = vmatmul.msk.bf16.vlgmr.msra.gmra.mxu0 %vm227_vm1, %v408_v6  ;;  %403 = vmatmul.msk.bf16.vlgmr.msra.gmra.mxu1 %vm227_vm1, %v409_v7 }
  0x1d   : > { %404 = vmatmul.msk.bf16.vlgmr.msra.gmra.mxu2 %vm227_vm1, %v410_v8  ;;  %405 = vmatmul.msk.bf16.vlgmr.msra.gmra.mxu3 %vm227_vm1, %v411_v9 }
  0x99   : > { %v253_v10 = vpop.f32.mrf.mxu0  ;;  %v258_v11 = vpop.f32.mrf.mxu1 }
  0x9a   : > { %v254_v13 = vadd.f32 %v454_v12, %v253_v10  ;;  %v259_v14 = vadd.f32 %v454_v12, %v258_v11 }
  0x9c   : > { %v281_v19 = vmul.f32 0.2, %v254_v13  ;;  %v283_v20 = vmul.f32 0.2, %v259_v14  ;;  %vm273_vm2 = vcmp.gt.f32.partialorder %v254_v13, 0.0  ;;  %vm275_vm3 = vcmp.gt.f32.partialorder %v259_v14, 0.0 }
  0x9e   : > { %v289_v27 = vsel %vm273_vm2, %v254_v13, %v281_v19  ;;  %v291_v28 = vsel %vm275_vm3, %v259_v14, %v283_v20 }
  0xa0   : > { %v263_v15 = vpop.f32.mrf.mxu2  ;;  %v268_v16 = vpop.f32.mrf.mxu3 }
  0xa1   : > { %v255_v17 = vpop.f32.mrf.mxu0  ;;  %v260_v18 = vpop.f32.mrf.mxu1  ;;  %v264_v25 = vadd.f32 %v454_v12, %v263_v15  ;;  %v269_v26 = vadd.f32 %v454_v12, %v268_v16 }
  0xa2   : > { %v256_v21 = vadd.f32 %v454_v12, %v255_v17  ;;  %v261_v22 = vadd.f32 %v454_v12, %v260_v18 }
  0xa3   : > { %v285_v35 = vmul.f32 0.2, %v264_v25  ;;  %v287_v36 = vmul.f32 0.2, %v269_v26  ;;  %vm277_vm6 = vcmp.gt.f32.partialorder %v264_v25, 0.0  ;;  %vm279_vm7 = vcmp.gt.f32.partialorder %v269_v26, 0.0 }
  0xa4   : > { %vm274_vm4 = vcmp.gt.f32.partialorder %v256_v21, 0.0  ;;  %v282_v23 = vmul.f32 0.2, %v256_v21  ;;  %vm276_vm5 = vcmp.gt.f32.partialorder %v261_v22, 0.0  ;;  %v284_v24 = vmul.f32 0.2, %v261_v22 }
  0xa5   : > { %v293_v41 = vsel %vm277_vm6, %v264_v25, %v285_v35  ;;  %v295_v42 = vsel %vm279_vm7, %v269_v26, %v287_v36 }
  0xa6   : > { %v290_v29 = vsel %vm274_vm4, %v256_v21, %v282_v23  ;;  %v292_v30 = vsel %vm276_vm5, %v261_v22, %v284_v24 }
  0xa7   : > { %v417_v31 = vpack.c.bf16 %v290_v29, %v289_v27  ;;  %v422_v32 = vpack.c.bf16 %v292_v30, %v291_v28 }
  0xa8   : > { %v265_v33 = vpop.f32.mrf.mxu2  ;;  %v270_v34 = vpop.f32.mrf.mxu3 }
  0xa9   : > { %418 = vst [vmem:[%s172_s29] sm:$0xff] %v417_v31   ;;  %v266_v37 = vadd.f32 %v454_v12, %v265_v33  ;;  %v271_v38 = vadd.f32 %v454_v12, %v270_v34 }
  0xaa   : > { %434 = vst [vmem:[%s172_s29 + $0x8] sm:$0xff] %v422_v32  }
  0xab   : > { %vm278_vm8 = vcmp.gt.f32.partialorder %v266_v37, 0.0  ;;  %v286_v39 = vmul.f32 0.2, %v266_v37  ;;  %vm280_vm9 = vcmp.gt.f32.partialorder %v271_v38, 0.0  ;;  %v288_v40 = vmul.f32 0.2, %v271_v38 }
  0xad   : > { %v294_v43 = vsel %vm278_vm8, %v266_v37, %v286_v39  ;;  %v296_v44 = vsel %vm280_vm9, %v271_v38, %v288_v40 }
  0xae   : > { %v427_v45 = vpack.c.bf16 %v294_v43, %v293_v41  ;;  %v432_v46 = vpack.c.bf16 %v296_v44, %v295_v42 }
  0xb0   : > { %435 = vst [vmem:[%s172_s29 + $0x10] sm:$0xff] %v427_v45  }
  0xb1   : > { %436 = vst [vmem:[%s172_s29 + $0x18] sm:$0xff] %v432_v46  }
  0xb2 PF: > { %s13_s12 = sadd.s32 1, %s461_s12  }
  0xb3   : > { %p10_p4 = scmp.ge.s32.totalorder %s13_s12, 4  }
  0xb5   :  { %12 = sbr.rel (!%p10_p4) target bundleno = 1 (0x1), region = 62 }

</bundles_post_ra>
